<compile_context>
chip_gen: v7x
topology: tpu7x:2x2x1
jax: 0.10.0
libtpu: 0.0.40
codegen_flags: <defaults>
</compile_context>

<pallas_src>
import functools
import math

import jax
import jax.numpy as jnp
from jax import lax
from jax.experimental import pallas as pl
from jax.experimental.pallas import tpu as pltpu

LRELU_SLOPE = 0.1


def _round_up(x, m):
    return ((x + m - 1) // m) * m


@functools.lru_cache(maxsize=None)
def _vmem_limit_bytes():
    """Generation-aware VMEM budget."""
    try:
        cap = int(pltpu.get_tpu_info().vmem_capacity_bytes)
    except Exception:
        return 48 * 1024 * 1024           # conservative fallback (fits v7x)
    if cap >= 96 * 1024 * 1024:
        return 100 * 1024 * 1024          # v5e / v6e: 128 MiB physical
    return 48 * 1024 * 1024               # v7x: 64 MiB physical


def _cparams():
    return pltpu.CompilerParams(dimension_semantics=("parallel",),
                                vmem_limit_bytes=_vmem_limit_bytes())


# --------------------------------------------------------------------------
# Pallas kernels
# --------------------------------------------------------------------------
def _conv_fused_kernel(x_ref, w_ref, b_ref, o_ref, *,
                       ksize, act_in, residual, act_out):
    """'same' 1D conv as a single im2col bf16 matmul with f32 accumulation.

    x_ref: (1, T+K-1, Cin_pad) bf16,  w_ref: (K*Cin_pad, Cout_pad) bf16,
    b_ref: (1, Cout_pad) f32,         o_ref: (1, T, Cout_pad).
    Optional: leaky-ReLU on the input slab (hoisted, done once in bf16),
    residual add of the un-activated center slice, leaky-ReLU epilogue
    (the next conv's input activation)."""
    t_out = o_ref.shape[1]
    x = x_ref[0]                                          # (Tp, Cin_pad) bf16
    xin = jnp.where(x >= 0, x, x * LRELU_SLOPE) if act_in else x
    # im2col: lane-aligned concat of the K shifted slices -> one deep matmul.
    cols = jnp.concatenate([xin[k:k + t_out, :] for k in range(ksize)], axis=-1)
    acc = jnp.dot(cols, w_ref[...], preferred_element_type=jnp.float32)
    acc = acc + b_ref[...]
    if residual:
        pad = (ksize - 1) // 2
        acc = acc + x[pad:pad + t_out, :].astype(jnp.float32)
    if act_out:
        acc = jnp.where(acc >= 0, acc, acc * LRELU_SLOPE)
    o_ref[0] = acc.astype(o_ref.dtype)


def _post_istft_kernel(x_ref, w_ref, b_ref, cs_ref, win_ref, wsuminv_ref, o_ref,
                       *, ksize, f_pad, hop, t_frames):
    """Fused conv_post + spec/phase heads + iSTFT for one batch element.

    x_ref: (1, T_big+K-1, Cin_pad) bf16 (already leaky-ReLU'd, extra (R-1)
           rows of zero padding on top / bottom so the frame axis can be
           over-computed and masked),
    w_ref: (K*Cin_pad, 2*F_pad) bf16 (merged spec|phase head),
    b_ref: (1, 2*F_pad) f32,
    cs_ref: (2*F_pad, n_fft) bf16 stacked [cmat; smat] inverse-rDFT basis
            (zero rows for lane-padded bins),
    win_ref: (1, n_fft) f32,  wsuminv_ref: (rows_pad, hop) f32,
    o_ref: (1, rows_pad, hop) f32 overlap-added, window^2-normalized audio."""
    t_big = x_ref.shape[1] - (ksize - 1)
    rows_pad = o_ref.shape[1]
    x = x_ref[0]                                          # (Tp, Cin_pad) bf16

    # conv_post via im2col, merged spec|phase accumulator.
    cols = jnp.concatenate([x[k:k + t_big, :] for k in range(ksize)], axis=-1)
    acc = jnp.dot(cols, w_ref[...], preferred_element_type=jnp.float32)
    acc = acc + b_ref[...]                                # (T_big, 2*F_pad)

    spec = jnp.exp(acc[:, :f_pad])                        # magnitude head
    ph = jnp.sin(acc[:, f_pad:])                          # phase head
    real = spec * jnp.cos(ph)
    imag = spec * jnp.sin(ph)
    ri = jnp.concatenate([real, imag], axis=-1).astype(jnp.bfloat16)

    # bf16 irfft matmul (padded bins hit exactly-zero basis rows).
    frames = jnp.dot(ri, cs_ref[...], preferred_element_type=jnp.float32)
    n_fft = frames.shape[1]
    r_chunks = n_fft // hop

    # Window, and zero the over-computed frame rows: real frames live at
    # big-row indices [r_chunks-1, r_chunks-1 + t_frames).
    row = lax.broadcasted_iota(jnp.int32, (t_big, n_fft), 0)
    valid = (row >= r_chunks - 1) & (row < r_chunks - 1 + t_frames)
    frames = jnp.where(valid, frames * win_ref[...], 0.0)

    # Overlap-add accumulated locally (R shifted value-slices of the extended
    # frame block); single store of the output block at the end.
    acc_ola = None
    for r in range(r_chunks):
        start = r_chunks - 1 - r
        part = frames[start:start + rows_pad, r * hop:(r + 1) * hop]
        acc_ola = part if acc_ola is None else acc_ola + part
    o_ref[0] = acc_ola * wsuminv_ref[...]                 # window^2 normalization


# --------------------------------------------------------------------------
# Wrappers
# --------------------------------------------------------------------------
def conv1d_fused(x, w, b, *, act_in, residual, act_out, out_dtype):
    """x: (B, T, Cx), w: (K, Cin, Cout), b: (Cout,)-ish -> (B, T, Cout_pad).

    Channels are zero-padded to multiples of 128; callers must guarantee that
    x's channels beyond Cin are zero (true in this pipeline: they come from
    the previous conv's zero-padded output channels)."""
    B, T, Cx = x.shape
    K, Cin, Cout = w.shape
    assert Cx >= Cin
    cin_pad = _round_up(Cx, 128)
    cout_pad = _round_up(Cout, 128)
    if residual:
        assert Cin == Cout and cin_pad == cout_pad
    pad_t = (K - 1) // 2
    xp = jnp.pad(x.astype(jnp.bfloat16),
                 ((0, 0), (pad_t, pad_t), (0, cin_pad - Cx)))
    Tp = T + 2 * pad_t
    w2 = jnp.pad(w, ((0, 0), (0, cin_pad - Cin), (0, cout_pad - Cout)))
    w2 = w2.reshape(K * cin_pad, cout_pad).astype(jnp.bfloat16)
    b2 = jnp.pad(jnp.reshape(b, (1, Cout)),
                 ((0, 0), (0, cout_pad - Cout))).astype(jnp.float32)

    kernel = functools.partial(_conv_fused_kernel, ksize=K, act_in=act_in,
                               residual=residual, act_out=act_out)
    return pl.pallas_call(
        kernel,
        out_shape=jax.ShapeDtypeStruct((B, T, cout_pad), out_dtype),
        grid_spec=pltpu.PrefetchScalarGridSpec(
            num_scalar_prefetch=0,
            grid=(B,),
            in_specs=[
                pl.BlockSpec((1, Tp, cin_pad), lambda bi: (bi, 0, 0)),
                pl.BlockSpec((K * cin_pad, cout_pad), lambda bi: (0, 0)),
                pl.BlockSpec((1, cout_pad), lambda bi: (0, 0)),
            ],
            out_specs=pl.BlockSpec((1, T, cout_pad), lambda bi: (bi, 0, 0)),
        ),
        compiler_params=_cparams(),
    )(xp, w2, b2)


def conv_post_istft(x, w_post, b_post, *, n_fft, hop, win_length):
    """Fused conv_post + exp/sin heads + iSTFT OLA.

    x: (B, T, Cpad) bf16 already-activated, zero-padded channels.
    Returns (B, rows_pad, hop) f32 OLA'd, window^2-normalized audio rows
    (rows = T + n_fft//hop - 1 valid rows, padded up to a multiple of 8)."""
    B, T, Cx = x.shape
    K, Cin, C2 = w_post.shape
    F_bins = n_fft // 2 + 1
    assert C2 == 2 * F_bins
    assert win_length == n_fft      # TODO(synk): window zero-padding if win_length < n_fft
    assert n_fft % hop == 0
    assert Cx >= Cin and Cx % 128 == 0

    f_pad = _round_up(F_bins, 128)
    cin_pad = Cx
    pad_t = (K - 1) // 2
    R = n_fft // hop
    rows = T + R - 1
    rows_pad = _round_up(rows, 8)
    t_big = rows_pad + R - 1                 # over-computed frame rows (masked)

    top = (R - 1) + pad_t
    bottom = (t_big + K - 1) - (top + T)
    xp = jnp.pad(x, ((0, 0), (top, bottom), (0, 0)))
    Tp = t_big + K - 1

    # merged (spec | phase) head weights, lane-padded to f_pad each
    pc = f_pad - F_bins
    w_spec = jnp.pad(w_post[:, :, :F_bins],
                     ((0, 0), (0, cin_pad - Cin), (0, pc)))
    w_phase = jnp.pad(w_post[:, :, F_bins:],
                      ((0, 0), (0, cin_pad - Cin), (0, pc)))
    w_merged = jnp.concatenate([w_spec, w_phase], axis=-1)
    w_merged = w_merged.reshape(K * cin_pad, 2 * f_pad).astype(jnp.bfloat16)
    b_flat = jnp.reshape(b_post, (2 * F_bins,))
    b_merged = jnp.concatenate([jnp.pad(b_flat[:F_bins], (0, pc)),
                                jnp.pad(b_flat[F_bins:], (0, pc))])
    b_merged = b_merged.reshape(1, 2 * f_pad).astype(jnp.float32)

    # periodic hann window
    n = jnp.arange(win_length, dtype=jnp.float32)
    window = 0.5 * (1.0 - jnp.cos(2.0 * math.pi * n / win_length))

    # inverse real-DFT basis (matches irfft), stacked [cmat; smat] with zero
    # rows for the lane-padded bins; bf16 for the MXU.
    k = jnp.arange(F_bins, dtype=jnp.float32)[:, None]
    nn = jnp.arange(n_fft, dtype=jnp.float32)[None, :]
    coef = jnp.where((k == 0) | (k == n_fft // 2), 1.0, 2.0)
    ang = 2.0 * math.pi * k * nn / n_fft
    cmat = coef * jnp.cos(ang) / n_fft                    # (F, N)
    smat = -coef * jnp.sin(ang) / n_fft                   # (F, N)
    cs = jnp.concatenate([jnp.pad(cmat, ((0, pc), (0, 0))),
                          jnp.pad(smat, ((0, pc), (0, 0)))],
                         axis=0).astype(jnp.bfloat16)     # (2*F_pad, N)
    win2d = window.reshape(1, n_fft)

    # window^2 overlap-add envelope (plain JAX, tiny)
    win2_chunks = (window ** 2).reshape(R, hop)
    wsum = jnp.zeros((rows_pad, hop), jnp.float32)
    for r in range(R):
        wsum = wsum.at[r:r + T, :].add(jnp.broadcast_to(win2_chunks[r], (T, hop)))
    wsum_inv = jnp.where(wsum > 1e-11, 1.0 / wsum, 0.0)

    kernel = functools.partial(_post_istft_kernel, ksize=K, f_pad=f_pad,
                               hop=hop, t_frames=T)
    y = pl.pallas_call(
        kernel,
        out_shape=jax.ShapeDtypeStruct((B, rows_pad, hop), jnp.float32),
        grid_spec=pltpu.PrefetchScalarGridSpec(
            num_scalar_prefetch=0,
            grid=(B,),
            in_specs=[
                pl.BlockSpec((1, Tp, cin_pad), lambda bi: (bi, 0, 0)),
                pl.BlockSpec((K * cin_pad, 2 * f_pad), lambda bi: (0, 0)),
                pl.BlockSpec((1, 2 * f_pad), lambda bi: (0, 0)),
                pl.BlockSpec((2 * f_pad, n_fft), lambda bi: (0, 0)),
                pl.BlockSpec((1, n_fft), lambda bi: (0, 0)),
                pl.BlockSpec((rows_pad, hop), lambda bi: (0, 0)),
            ],
            out_specs=pl.BlockSpec((1, rows_pad, hop), lambda bi: (bi, 0, 0)),
        ),
        compiler_params=_cparams(),
    )(xp, w_merged, b_merged, cs, win2d, wsum_inv)
    return y, rows


def init_generator_params(key, num_mels, hidden, n_fft):
    k1, k2, k3 = jax.random.split(key, 3)
    scale = 0.05
    return {
        'conv_pre_w': scale * jax.random.normal(k1, (7, num_mels, hidden), jnp.float32),
        'conv_pre_b': jnp.zeros((1, hidden), jnp.float32),
        'res_w': scale * jax.random.normal(k2, (3, hidden, hidden), jnp.float32),
        'res_b': jnp.zeros((1, hidden), jnp.float32),
        'conv_post_w': scale * jax.random.normal(k3, (7, hidden, n_fft + 2), jnp.float32),
        'conv_post_b': jnp.zeros((1, n_fft + 2), jnp.float32),
    }


def lightvoc_forward(params, stft_cfg, batch):
    """Mirrors LightVoc.forward (mel supplied in batch, mel_config=None path):
    writes batch['pred_audio'] = istft(generator(mel))."""
    batch = dict(batch)
    n_fft = stft_cfg['filter_length']
    hop = stft_cfg['hop_length']
    win_length = stft_cfg['win_length']

    # --- generator (representative iSTFTNet-style head) ---
    x = jnp.transpose(batch['mel'], (0, 2, 1))             # NCL -> (B, T, n_mels)
    x = conv1d_fused(x, params['conv_pre_w'], params['conv_pre_b'],
                     act_in=False, residual=False, act_out=False,
                     out_dtype=jnp.bfloat16)
    # residual conv: out = lrelu(x + conv(lrelu(x)))  (next conv's input
    # activation fused here; lrelu(0)=0 so zero padding commutes)
    x = conv1d_fused(x, params['res_w'], params['res_b'],
                     act_in=True, residual=True, act_out=True,
                     out_dtype=jnp.bfloat16)

    # --- fused conv_post + spec/phase heads + iSTFT ---
    y, rows = conv_post_istft(x, params['conv_post_w'], params['conv_post_b'],
                              n_fft=n_fft, hop=hop, win_length=win_length)
    B = y.shape[0]
    y_full = y[:, :rows, :].reshape(B, rows * hop)
    pad = n_fft // 2                                       # center=True trim
    y_out = y_full[:, pad:rows * hop - pad]                # (B, hop*(T-1))

    length = batch['audio'].shape[2] if 'audio' in batch else None
    if length is not None:
        cur = y_out.shape[1]
        if length <= cur:
            y_out = y_out[:, :length]
        else:
            y_out = jnp.pad(y_out, ((0, 0), (0, length - cur)))
    batch['pred_audio'] = y_out[:, None, :]                # unsqueeze(-2)
    return batch


if __name__ == "__main__":
    key = jax.random.PRNGKey(0)
    kmel, kaud, kpar = jax.random.split(key, 3)

    B, n_mels, T_frames = 2, 8, 8
    hidden = 32
    stft_cfg = dict(filter_length=16, hop_length=4, win_length=16)

    mel = jax.random.normal(kmel, (B, n_mels, T_frames), jnp.float32)          # NCL
    audio = jax.random.normal(kaud, (B, 1, T_frames * stft_cfg['hop_length']),
                              jnp.float32)                                      # NCL

    params = init_generator_params(kpar, n_mels, hidden, stft_cfg['filter_length'])
    batch = {'mel': mel, 'audio': audio}

    out = lightvoc_forward(params, stft_cfg, batch)
    pred = jax.block_until_ready(out['pred_audio'])
    assert pred.shape == (B, 1, audio.shape[2]), pred.shape
    assert bool(jnp.all(jnp.isfinite(pred)))
    print("KERNEL_OK")
</pallas_src>

<mosaic_0001>
module attributes {stable_mosaic.version = 11 : i64} {
  func.func @_conv_fused_kernel(%arg0: i32, %arg1: memref<1x14x128xbf16, #tpu.memory_space<vmem>>, %arg2: memref<896x128xbf16, #tpu.memory_space<vmem>>, %arg3: memref<1x128xf32, #tpu.memory_space<vmem>>, %arg4: memref<1x8x128xbf16, #tpu.memory_space<vmem>>) attributes {dimension_semantics = [#tpu.dimension_semantics<parallel>], iteration_bounds = array<i64: 2>, scalar_prefetch = 0 : i64, scratch_operands = 0 : i64, tpu.core_type = #tpu.core_type<tc>, window_params = [{transform_indices = @transform_0, window_bounds = array<i64: 1, 14, 128>}, {pipeline_mode = #tpu.pipeline_mode<synchronous>, transform_indices = @transform_1, window_bounds = array<i64: 896, 128>}, {pipeline_mode = #tpu.pipeline_mode<synchronous>, transform_indices = @transform_2, window_bounds = array<i64: 1, 128>}, {transform_indices = @transform_3, window_bounds = array<i64: 1, 8, 128>}]} {
    %c0 = arith.constant 0 : index
    %c0_0 = arith.constant 0 : index
    %c0_1 = arith.constant 0 : index
    %0 = vector.load %arg1[%c0, %c0_0, %c0_1] : memref<1x14x128xbf16, #tpu.memory_space<vmem>>, vector<1x14x128xbf16>
    %1 = vector.shape_cast %0 : vector<1x14x128xbf16> to vector<14x128xbf16>
    %2 = vector.extract_strided_slice %1 {offsets = [0, 0], sizes = [8, 128], strides = [1, 1]} : vector<14x128xbf16> to vector<8x128xbf16>
    %3 = vector.extract_strided_slice %1 {offsets = [1, 0], sizes = [8, 128], strides = [1, 1]} : vector<14x128xbf16> to vector<8x128xbf16>
    %4 = vector.extract_strided_slice %1 {offsets = [2, 0], sizes = [8, 128], strides = [1, 1]} : vector<14x128xbf16> to vector<8x128xbf16>
    %5 = vector.extract_strided_slice %1 {offsets = [3, 0], sizes = [8, 128], strides = [1, 1]} : vector<14x128xbf16> to vector<8x128xbf16>
    %6 = vector.extract_strided_slice %1 {offsets = [4, 0], sizes = [8, 128], strides = [1, 1]} : vector<14x128xbf16> to vector<8x128xbf16>
    %7 = vector.extract_strided_slice %1 {offsets = [5, 0], sizes = [8, 128], strides = [1, 1]} : vector<14x128xbf16> to vector<8x128xbf16>
    %8 = vector.extract_strided_slice %1 {offsets = [6, 0], sizes = [8, 128], strides = [1, 1]} : vector<14x128xbf16> to vector<8x128xbf16>
    %9 = tpu.concatenate %2, %3, %4, %5, %6, %7, %8 in 1 : vector<8x128xbf16>, vector<8x128xbf16>, vector<8x128xbf16>, vector<8x128xbf16>, vector<8x128xbf16>, vector<8x128xbf16>, vector<8x128xbf16> -> vector<8x896xbf16>
    %c0_2 = arith.constant 0 : index
    %c0_3 = arith.constant 0 : index
    %10 = vector.load %arg2[%c0_2, %c0_3] : memref<896x128xbf16, #tpu.memory_space<vmem>>, vector<896x128xbf16>
    %cst = arith.constant dense<0.000000e+00> : vector<8x128xf32>
    %11 = tpu.matmul %9, %10, %cst {dimension_numbers = #tpu.dot_dimension_numbers<[1], [0], [0], [1], [0, 0, 1, 1], [], []>} : vector<8x896xbf16>, vector<896x128xbf16>, vector<8x128xf32> -> vector<8x128xf32>
    %c0_4 = arith.constant 0 : index
    %c0_5 = arith.constant 0 : index
    %12 = vector.load %arg3[%c0_4, %c0_5] : memref<1x128xf32, #tpu.memory_space<vmem>>, vector<1x128xf32>
    %13 = vector.broadcast %12 : vector<1x128xf32> to vector<8x128xf32>
    %14 = arith.addf %11, %13 : vector<8x128xf32>
    %15 = arith.truncf %14 : vector<8x128xf32> to vector<8x128xbf16>
    %c0_6 = arith.constant 0 : index
    %c0_7 = arith.constant 0 : index
    %c0_8 = arith.constant 0 : index
    %16 = vector.load %arg4[%c0_6, %c0_7, %c0_8] : memref<1x8x128xbf16, #tpu.memory_space<vmem>>, vector<1x8x128xbf16>
    %17 = vector.shape_cast %16 : vector<1x8x128xbf16> to vector<8x128xbf16>
    %18 = vector.shape_cast %15 : vector<8x128xbf16> to vector<1x8x128xbf16>
    tpu.vector_store %arg4[%c0_6, %c0_7, %c0_8], %18 {strides = array<i32>} : memref<1x8x128xbf16, #tpu.memory_space<vmem>>, vector<1x8x128xbf16>,
    return
  }
  func.func @transform_0(%arg0: i32) -> (i32, i32, i32) {
    %c0_i32 = arith.constant 0 : i32
    %c0_i32_0 = arith.constant 0 : i32
    %c0_i32_1 = arith.constant 0 : i32
    return %arg0, %c0_i32, %c0_i32_0 : i32, i32, i32
  }
  func.func @transform_1(%arg0: i32) -> (i32, i32) {
    %c0_i32 = arith.constant 0 : i32
    %c0_i32_0 = arith.constant 0 : i32
    %c0_i32_1 = arith.constant 0 : i32
    return %c0_i32, %c0_i32_0 : i32, i32
  }
  func.func @transform_2(%arg0: i32) -> (i32, i32) {
    %c0_i32 = arith.constant 0 : i32
    %c0_i32_0 = arith.constant 0 : i32
    %c0_i32_1 = arith.constant 0 : i32
    return %c0_i32, %c0_i32_0 : i32, i32
  }
  func.func @transform_3(%arg0: i32) -> (i32, i32, i32) {
    %c0_i32 = arith.constant 0 : i32
    %c0_i32_0 = arith.constant 0 : i32
    %c0_i32_1 = arith.constant 0 : i32
    return %arg0, %c0_i32, %c0_i32_0 : i32, i32, i32
  }
}

</mosaic_0001>

<bundles_post_ra>
// kernel: tpu_custom_call.1
= control target key start
LH: loop header
LB: loop body
LE: loop exit
PB: predicated region body
PF: predicated region fallthrough
CT: control target
= control target key end

     0   :  { %8 = vsyncpa [#allocation3], 0  ;;  %s1470_s0 = inlined_call_operand.vmem [shape: bf16[2,14,128], index: 0, kind: input, shape index: {}]   ;;  %s1471_s1 = inlined_call_operand.hbm [shape: bf16[896,128], index: 1, kind: input, shape index: {}]   ;;  %s1472_s2 = inlined_call_operand.vmem [shape: f32[1,128], index: 2, kind: input, shape index: {}]   ;;  %s1473_s3 = inlined_call_operand.hbm [shape: bf16[2,8,128], index: 3, kind: output, shape index: {}]  }
   0x1   :  { %9 = vsyncpa [#allocation4], 0 }
   0x2   :  { %11 = vsyncpa [#allocation4 + $0x1], 0  ;;  %s1316_s12 = smov 0   ;;  %s1318_s13 = smov 0  }
   0x3   :  { %s1320_s14 = smov 0   ;;  %s1322_s15 = smov 0  }
   0x4 LB: > { %s1337_s16 = sadd.s32 4294967295, %s1288_s15   ;;  %s916_s17 = sadd.s32 4294967294, %s1288_s15   ;;  %s1288_s15 = sphi %s1322_s15, %s1489_s15   ;;  %s1284_s14 = sphi %s1320_s14, %s1488_s14   ;;  %s1280_s13 = sphi %s1318_s13, %s1487_s13   ;;  %s1276_s12 = sphi %s1316_s12, %s1486_s12  }
   0x5   : > { %s1341_s18 = sadd.s32 1, %s1288_s15   ;;  %s92_s19 = sadd.s32 1, %s1284_s14 }
   0x6   : > { %s89_s20 = ssub.s32 %s1288_s15, %s1341_s18  ;;  %p102_p0 = scmp.ne.s32.totalorder %s1284_s14, %s1280_s13 }
   0x7   : > { %p90_p1 = scmp.eq.s32.totalorder %s89_s20, 0  ;;  %p103_p2 = scmp.eq.s32.totalorder %s1337_s16, 1 }
   0x8   : > { %p108_p3 = scmp.ne.s32.totalorder %s1280_s13, %s1276_s12  ;;  %p109_p4 = scmp.eq.s32.totalorder %s916_s17, 1 }
   0x9   : > { %s1352_s21 = scalar_select %p90_p1, %s1284_s14, %s92_s19  }
   0xa   : > { %p1354_p5 = por %p103_p2, %p102_p0  ;;  %p1358_p6 = por %p109_p4, %p108_p3 }
   0xb   : > { %p917_p7 = scmp.ge.s32.totalorder %s1288_s15, 1  ;;  %p116_p8 = scmp.lt.s32.totalorder %s1288_s15, 3 }
   0xc   : > { %s1477_s22 = scalar_select %p1354_p5, 1, 0 }
   0xd   : > { %s1478_s23 = scalar_select %p1358_p6, 1, 0 }
   0xe   : > { %p1474_p9 = scmp.eq.s32.totalorder %s1337_s16, 0  ;;  %p1365_p10 = pnand %p917_p7, %p116_p8 }
   0xf   : > { %s1290_s25 = smov [#allocation2]   ;;  %s1194_s30 = scalar_lea.hbm %s1471_s1, 7168 }
  0x10   : > { %s1479_s24 = scalar_select %p1365_p10, 1, 0 }
  0x11   : > { %s128_s26 = sshll.u32 %s1290_s25, 4  ;;  %p1089_p11 = pneg %p1365_p10  ;;  %s129_s26 = int_to_ptr.vmem [resolvable:$true] %s128_s26 }
  0x12   : > { %p1195_p13 = scmp.ne.s32.totalorder %s1471_s1, %s1194_s30  ;;  %p1201_p3 = scmp.lt.u32.totalorder %s1194_s30, %s1471_s1 }
  0x13   : > { %p1373_p12 = pnand %p1474_p9, %p1089_p11 }
  0x15   : > { %p1196_p0 = pneg %p1373_p12 }
  0x17   : > { %p1197_p1 = pnand %p1196_p0, %p1195_p13 }
  0x19   : > { %p1198_p2 = pneg %p1197_p1 }
  0x1b   : > { %p1203_p4 = pnand %p1201_p3, %p1198_p2 }
  0x1d   : > { %1206 = shalt.err (!%p1203_p4)
}
  0x1e   : > { %s1207_s8 = scalar_lea.vmem %s129_s26, 7168  ;;  %p1215_p9 = scmp.lt.s32.totalorder %s129_s26, %s129_s26 }
  0x1f   : > { %p1208_p7 = scmp.ne.s32.totalorder %s129_s26, %s1207_s8  ;;  %p1216_p6 = scmp.lt.s32.totalorder %s1207_s8, %s1207_s8 }
  0x21   : > { %p1210_p8 = pnand %p1208_p7, %p1196_p0  ;;  %p1217_p5 = por %p1216_p6, %p1215_p9 }
  0x23   : > { %p1211_p11 = pneg %p1210_p8 }
  0x25   : > { %p1218_p10 = pnand %p1217_p5, %p1211_p11 }
  0x27   : > { %1221 = shalt.err (!%p1218_p10)
}
  0x28   : > { %s1291_s9 = smov 64   ;;  %s1292_s10 = smov 4  }
  0x29   : > { %1092 = dma.hbm_to_vmem [thread:$0]  (!%p1373_p12), %s1471_s1, 7168, %s129_s26, [#allocation3], %s1291_s9, %s1291_s9, %s1292_s10  }
  0x2a   : > { %p1481_p13 = scmp.ne.s32.totalorder %s1479_s24, 0 }
  0x2b   : > { %p1482_p1 = scmp.eq.s32.totalorder (!%p1481_p13), %s1337_s16, 0 }
  0x2c   : > { %155 = sbr.rel (%p1481_p13) target bundleno = 352 (0x160), region = 32 }
  0x33   : > { %1267 = dma.done.wait (%p1482_p1), [#allocation3], 7168   ;;  %p1483_p0 = pmov %p1482_p1 }
  0x34   : > { %v1137_v0 = vld [vmem:[#allocation2 + $0x40] sm:$0xff]   ;;  %v1141_v4 = vld [vmem:[#allocation2 + $0x48] sm:$0xff]   ;;  %v1145_v8 = vld [vmem:[#allocation2 + $0x50] sm:$0xff]   ;;  %p179_p5 = scmp.lt.s32.totalorder %s1337_s16, 1  ;;  %v1293_v38 = vmov 0.0   ;;  %vm1294_vm0 = vmmov 0  }
  0x35   : > { %1269 = vsyncadd (%p1483_p0), [#allocation3], 4294960128  ;;  %v1138_v1 = vld [vmem:[#allocation2] sm:$0xff]   ;;  %988 = vmatprep.subr.bf16.mxu0 %v1137_v0  ;;  %v1142_v5 = vld [vmem:[#allocation2 + $0x8] sm:$0xff]   ;;  %s176_s29 = sand.u32 1, %s1280_s13   ;;  %s984_s4 = sshll.u32 %s1337_s16, 6 }
  0x36   : > { %v1139_v2 = vld [vmem:[#allocation2 + $0xc0] sm:$0xff]   ;;  %989 = vmatpush3.bf16.msra.mxu0 %v1138_v1  ;;  %v1143_v6 = vld [vmem:[#allocation2 + $0xc8] sm:$0xff]   ;;  %v1146_v9 = vld [vmem:[#allocation2 + $0x10] sm:$0xff]   ;;  %s180_s19 = scalar_select %p179_p5, %s1337_s16, 1 }
  0x37   : > { %v1140_v3 = vld [vmem:[#allocation2 + $0x80] sm:$0xff]   ;;  %1010 = vmatprep.subr.bf16.mxu1 %v1139_v2  ;;  %990 = vmatprep.subr.bf16.mxu0 %v1141_v4  ;;  %v1144_v7 = vld [vmem:[#allocation2 + $0x88] sm:$0xff]   ;;  %v1147_v10 = vld [vmem:[#allocation2 + $0xd0] sm:$0xff]   ;;  %s922_s30 = sshll.u32 %s176_s29, 2  ;;  %s1428_s9 = scalar_lea.hbm %s1473_s3, %s984_s4 }
  0x38   : > { %1011 = vmatpush3.bf16.msra.mxu1 %v1140_v3  ;;  %v1148_v11 = vld [vmem:[#allocation2 + $0x90] sm:$0xff]   ;;  %v1149_v12 = vld [vmem:[#allocation2 + $0x58] sm:$0xff]   ;;  %v1153_v16 = vld [vmem:[#allocation2 + $0x60] sm:$0xff]   ;;  %s987_s20 = sshll.u32 %s180_s19, 3  ;;  %s178_s5 = scalar_lea.vmem [#allocation5], %s922_s30 }
  0x39   : > { %1012 = vmatprep.subr.bf16.mxu1 %v1143_v6  ;;  %v1150_v13 = vld [vmem:[#allocation2 + $0x18] sm:$0xff]   ;;  %v1154_v17 = vld [vmem:[#allocation2 + $0x20] sm:$0xff]   ;;  %v1157_v20 = vld [vmem:[#allocation2 + $0x68] sm:$0xff]   ;;  %s183_s26 = scalar_lea.vmem %s1470_s0, %s987_s20  ;;  %s845_s6 = sshll.u32 %s178_s5, 4  ;;  %s1430_s6 = int_to_ptr.vmem [resolvable:$true] %s845_s6 }
  0x3a   : > { %991 = vmatpush3.bf16.msra.mxu0 %v1142_v5  ;;  %v1151_v14 = vld [vmem:[#allocation2 + $0xd8] sm:$0xff]   ;;  %v1155_v18 = vld [vmem:[#allocation2 + $0xe0] sm:$0xff]   ;;  %v1158_v21 = vld [vmem:[#allocation2 + $0x28] sm:$0xff]   ;;  %s832_s10 = scalar_lea.sflag [#allocation4], %s176_s29  ;;  %s1222_s11 = scalar_lea.vmem %s1430_s6, 64 }
  0x3b   : > { %992 = vmatprep.subr.bf16.mxu0 %v1145_v8  ;;  %v1152_v15 = vld [vmem:[#allocation2 + $0x98] sm:$0xff]   ;;  %v1156_v19 = vld [vmem:[#allocation2 + $0xa0] sm:$0xff]   ;;  %v1159_v22 = vld [vmem:[#allocation2 + $0xe8] sm:$0xff]   ;;  %p1223_p6 = scmp.ne.s32.totalorder %s1430_s6, %s1222_s11  ;;  %p1484_p9 = scmp.ne.s32.totalorder %s1477_s22, 0 }
  0x3c   : > { %1013 = vmatpush3.bf16.msra.mxu1 %v1144_v7  ;;  %v1160_v23 = vld [vmem:[#allocation2 + $0xa8] sm:$0xff]   ;;  %v1161_v24 = vld [vmem:[#allocation2 + $0x70] sm:$0xff]   ;;  %v1165_v28 = vld [vmem:[#allocation2 + $0x78] sm:$0xff]   ;;  %s1295_s16 = smov [#allocation5]  }
  0x3d   : > { %1014 = vmatprep.subr.bf16.mxu1 %v1147_v10  ;;  %v1162_v25 = vld [vmem:[#allocation2 + $0x30] sm:$0xff]   ;;  %v1166_v29 = vld [vmem:[#allocation2 + $0x38] sm:$0xff]   ;;  %v1170_v35 = vld [vmem:[#allocation2 + $0x140] sm:$0xff]   ;;  %p1224_p10 = pnand %p1223_p6, %p1484_p9  ;;  %s1226_s17 = sshll.u32 %s1295_s16, 4  ;;  %s1227_s17 = int_to_ptr.vmem [resolvable:$false] %s1226_s17 }
  0x3e   : > { %993 = vmatpush3.bf16.msra.mxu0 %v1146_v9  ;;  %v1163_v26 = vld [vmem:[#allocation2 + $0xf0] sm:$0xff]   ;;  %v1167_v30 = vld [vmem:[#allocation2 + $0xf8] sm:$0xff]   ;;  %v1171_v42 = vld [vmem:[#allocation2 + $0x100] sm:$0xff]   ;;  %s1228_s19 = scalar_lea.vmem %s1227_s17, 128  ;;  %p1229_p2 = scmp.lt.s32.totalorder %s1430_s6, %s1227_s17 }
  0x3f   : > { %994 = vmatprep.subr.bf16.mxu0 %v1149_v12  ;;  %v1164_v27 = vld [vmem:[#allocation2 + $0xb0] sm:$0xff]   ;;  %v1169_v34 = vld [vmem:[#allocation2 + $0xb8] sm:$0xff]   ;;  %v1172_v46 = vld [vmem:[#allocation2 + $0x180] sm:$0xff]   ;;  %p1225_p12 = pneg %p1224_p10  ;;  %p1230_p3 = scmp.lt.s32.totalorder %s1228_s19, %s1222_s11 }
  0x40   : > { %1015 = vmatpush3.bf16.msra.mxu1 %v1148_v11  ;;  %v185_v31 = vld [vmem:[%s183_s26] sm:$0xf]  ;;  %v186_v32 = vld [vmem:[%s183_s26 + $0x4] sm:$0x7]  ;;  %v1173_v48 = vld [vmem:[#allocation2 + $0x148] sm:$0xff]  }
  0x41   : > { %1016 = vmatprep.subr.bf16.mxu1 %v1151_v14  ;;  %v1404_v33 = vcombine.low %v185_v31, %v186_v32  ;;  %v1174_v50 = vld [vmem:[#allocation2 + $0x108] sm:$0xff]   ;;  %v1176_v53 = vld [vmem:[#allocation2 + $0x150] sm:$0xff]   ;;  %v1179_v56 = vld [vmem:[#allocation2 + $0x158] sm:$0xff]   ;;  %p1231_p4 = por %p1230_p3, %p1229_p2 }
  0x42   : > { %995 = vmatpush3.bf16.msra.mxu0 %v1150_v13  ;;  %v1175_v52 = vld [vmem:[#allocation2 + $0x188] sm:$0xff]   ;;  %v1177_v54 = vld [vmem:[#allocation2 + $0x110] sm:$0xff]   ;;  %v1180_v57 = vld [vmem:[#allocation2 + $0x118] sm:$0xff]  }
  0x43   : > { %996 = vmatprep.subr.bf16.mxu0 %v1153_v16  ;;  %v193_v36 = vshrl.u32 %v1404_v33, 16  ;;  %v195_v37 = vshll.u32 %v1404_v33, 16  ;;  %v200_v43 = vrot.slane %v1404_v33, 1  ;;  %v1178_v55 = vld [vmem:[#allocation2 + $0x190] sm:$0xff]   ;;  %v1181_v58 = vld [vmem:[#allocation2 + $0x198] sm:$0xff]   ;;  %v1182_v59 = vld [vmem:[#allocation2 + $0x160] sm:$0xff]   ;;  %p1232_p7 = pnand %p1231_p4, %p1225_p12 }
  0x44   : > { %1017 = vmatpush3.bf16.msra.mxu1 %v1152_v15  ;;  %v1183_v60 = vld [vmem:[#allocation2 + $0x120] sm:$0xff]   ;;  %v1185_v62 = vld [vmem:[#allocation2 + $0x168] sm:$0xff]   ;;  %v1188_v1 = vld [vmem:[#allocation2 + $0x170] sm:$0xff]   ;;  %v206_v7 = vrot.slane %v1404_v33, 2  ;;  %v212_v8 = vrot.slane %v1404_v33, 3 }
  0x45   : > { %1018 = vmatprep.subr.bf16.mxu1 %v1155_v18  ;;  %v197_v39 = vrot.slane %v195_v37, 1  ;;  %v202_v40 = vrot.slane %v193_v36, 1  ;;  %v203_v41 = vrot.slane %v195_v37, 2  ;;  %v208_v47 = vrot.slane %v193_v36, 2  ;;  %v1184_v61 = vld [vmem:[#allocation2 + $0x1a0] sm:$0xff]   ;;  %v1186_v63 = vld [vmem:[#allocation2 + $0x128] sm:$0xff]  }
  0x46   : > { %997 = vmatpush3.bf16.msra.mxu0 %v1154_v17  ;;  %v209_v49 = vrot.slane %v195_v37, 3  ;;  %v1187_v0 = vld [vmem:[#allocation2 + $0x1a8] sm:$0xff]   ;;  %v1189_v2 = vld [vmem:[#allocation2 + $0x130] sm:$0xff]   ;;  %v1191_v4 = vld [vmem:[#allocation2 + $0x178] sm:$0xff]  }
  0x47   : > { %998 = vmatprep.subr.bf16.mxu0 %v1157_v20  ;;  %v198_v44 = vor.u32 %v197_v39, %v193_v36  ;;  %v204_v45 = vor.u32 %v203_v41, %v202_v40  ;;  %v1190_v3 = vld [vmem:[#allocation2 + $0x1b0] sm:$0xff]   ;;  %v1192_v5 = vld [vmem:[#allocation2 + $0x138] sm:$0xff]  }
  0x48   : > { %1019 = vmatpush3.bf16.msra.mxu1 %v1156_v19  ;;  %v210_v51 = vor.u32 %v209_v49, %v208_v47  ;;  %v1193_v6 = vld [vmem:[#allocation2 + $0x1b8] sm:$0xff]   ;;  %v926_v11 = vld [vmem:[%s1472_s2] ss:$0 sm:$0xff] }
  0x49   : > { %1020 = vmatprep.subr.bf16.mxu1 %v1159_v22  ;;  %701 = vmatprep.mubr.bf16.mxu0 %v198_v44 }
  0x4a   : > { %999 = vmatpush3.bf16.msra.mxu0 %v1158_v21  ;;  %741 = vmatprep.mubr.bf16.mxu1 %v204_v45 }
  0x4b   : > { %1000 = vmatprep.subr.bf16.mxu0 %v1161_v24 }
  0x4c   : > { %1021 = vmatpush3.bf16.msra.mxu1 %v1160_v23 }
  0x4d   : > { %1022 = vmatprep.subr.bf16.mxu1 %v1163_v26 }
  0x4e   : > { %1001 = vmatpush3.bf16.msra.mxu0 %v1162_v25 }
  0x4f   : > { %1002 = vmatprep.subr.bf16.mxu0 %v1165_v28 }
  0x50   : > { %1023 = vmatpush3.bf16.msra.mxu1 %v1164_v27 }
  0x51   : > { %1024 = vmatprep.subr.bf16.mxu1 %v1167_v30 }
  0x52   : > { %1003 = vmatpush3.bf16.msra.mxu0 %v1166_v29 }
  0x53   : > { %1032 = vmatprep.subr.bf16.mxu0 %v1170_v35 }
  0x54   : > { %1025 = vmatpush3.bf16.msra.mxu1 %v1169_v34 }
  0x55   : > { %1063 = vmatprep.subr.bf16.mxu1 %v1293_v38  ;;  %702 = vmatmul.mubr.bf16.vlgmr.msra.gmra.mrb[0].mxu0 %v185_v31 }
  0x56   : > { %1033 = vmatpush3.bf16.msra.mxu0 %v1171_v42  ;;  %781 = vmatprep.mubr.bf16.mxu0 %v210_v51 }
  0x57   : > { %742 = vmatmul.mubr.bf16.vlgmr.msra.gmra.mrb[0].mxu1 %v200_v43  ;;  %1034 = vmatprep.subr.bf16.mxu0 %v1173_v48 }
  0x58   : > { %1064 = vmatpush3.bf16.msra.mxu1 %v1172_v46  ;;  %1079 = vmatprep.mubr.msk.bf16.mxu1 %vm1294_vm0, %v1293_v38 }
  0x59   : > { %1065 = vmatprep.subr.bf16.mxu1 %v1293_v38 }
  0x5a   : > { %1035 = vmatpush3.bf16.msra.mxu0 %v1174_v50 }
  0x5b   : > { %1036 = vmatprep.subr.bf16.mxu0 %v1176_v53 }
  0x5c   : > { %1066 = vmatpush3.bf16.msra.mxu1 %v1175_v52 }
  0x5d   : > { %1067 = vmatprep.subr.bf16.mxu1 %v1293_v38 }
  0x5e   : > { %1037 = vmatpush3.bf16.msra.mxu0 %v1177_v54 }
  0x5f   : > { %1038 = vmatprep.subr.bf16.mxu0 %v1179_v56 }
  0x60   : > { %1068 = vmatpush3.bf16.msra.mxu1 %v1178_v55 }
  0x61   : > { %1069 = vmatprep.subr.bf16.mxu1 %v1293_v38 }
  0x62   : > { %1039 = vmatpush3.bf16.msra.mxu0 %v1180_v57 }
  0x63   : > { %1040 = vmatprep.subr.bf16.mxu0 %v1182_v59 }
  0x64   : > { %1070 = vmatpush3.bf16.msra.mxu1 %v1181_v58 }
  0x65   : > { %1071 = vmatprep.subr.bf16.mxu1 %v1293_v38 }
  0x66   : > { %1041 = vmatpush3.bf16.msra.mxu0 %v1183_v60 }
  0x67   : > { %1042 = vmatprep.subr.bf16.mxu0 %v1185_v62 }
  0x68   : > { %1072 = vmatpush3.bf16.msra.mxu1 %v1184_v61 }
  0x69   : > { %1073 = vmatprep.subr.bf16.mxu1 %v1293_v38 }
  0x6a   : > { %1043 = vmatpush3.bf16.msra.mxu0 %v1186_v63 }
  0x6b   : > { %1044 = vmatprep.subr.bf16.mxu0 %v1188_v1 }
  0x6c   : > { %1074 = vmatpush3.bf16.msra.mxu1 %v1187_v0 }
  0x6d   : > { %1075 = vmatprep.subr.bf16.mxu1 %v1293_v38 }
  0x6e   : > { %1045 = vmatpush3.bf16.msra.mxu0 %v1189_v2 }
  0x6f   : > { %1046 = vmatprep.subr.bf16.mxu0 %v1191_v4 }
  0x70   : > { %1076 = vmatpush3.bf16.msra.mxu1 %v1190_v3 }
  0x71   : > { %1077 = vmatprep.subr.bf16.mxu1 %v1293_v38 }
  0x72   : > { %1047 = vmatpush3.bf16.msra.mxu0 %v1192_v5 }
  0x74   : > { %1078 = vmatpush3.bf16.msra.mxu1 %v1193_v6 }
  0x75   : > { %782 = vmatmul.mubr.bf16.vlgmr.msra.gmra.mrb[4].mxu0 %v206_v7 }
  0x77   : > { %1080 = vmatmul.mubr.bf16.vlgmr.msra.gmra.mrb[4].mxu1 %v212_v8 }
 0x128   : > { %v1004_v9 = vpop.f32.mrb[0].mxu0 }
 0x129   : > { %v1005_v12 = vpop.f32.mrb[1].mxu0 }
 0x12a   : > { %v1026_v10 = vpop.f32.mrb[0].mxu1  ;;  %v1006_v14 = vadd.f32 %v1005_v12, %v1004_v9  ;;  %v1007_v15 = vpop.f32.mrb[2].mxu0 }
 0x12b   : > { %v1027_v13 = vpop.f32.mrb[1].mxu1  ;;  %v1008_v18 = vpop.f32.mrb[3].mxu0 }
 0x12c   : > { %v1028_v16 = vadd.f32 %v1027_v13, %v1026_v10  ;;  %v1029_v17 = vpop.f32.mrb[2].mxu1  ;;  %v704_v20 = vadd.f32 %v1006_v14, %v926_v11 }
 0x12d   : > { %v1030_v19 = vpop.f32.mrb[3].mxu1 }
 0x12e   : > { %v744_v21 = vadd.f32 %v1028_v16, %v704_v20 }
 0x148   : > { %v1048_v22 = vpop.f32.mrb[4].mxu0 }
 0x149   : > { %v1049_v24 = vpop.f32.mrb[5].mxu0 }
 0x14a   : > { %v823_v23 = vpop.f32.mrb[4].mxu1  ;;  %v1050_v26 = vadd.f32 %v1049_v24, %v1048_v22  ;;  %v1051_v27 = vpop.f32.mrb[6].mxu0 }
 0x14b   : > { %v1081_v25 = vpop.f32.mrb[5].mxu1  ;;  %v1052_v29 = vpop.f32.mrb[7].mxu0 }
 0x14c   : > { %v826_v28 = vpop.f32.mrb[6].mxu1  ;;  %v784_v31 = vadd.f32 %v1050_v26, %v744_v21 }
 0x14d   : > { %v1082_v30 = vpop.f32.mrb[7].mxu1 }
 0x14e   : > { %v824_v32 = vadd.f32 %v823_v23, %v784_v31 }
 0x150   : > { %v829_v33 = vpack.c.bf16 %v824_v32, %v824_v32 }
 0x152   : > { %830 = vst [vmem:[%s178_s5] sm:$0xf] %v829_v33 }
 0x153   : > { %1235 = shalt.err (!%p1232_p7)
}
 0x154   : > { %s1236_s20 = scalar_lea.hbm %s1428_s9, 64  ;;  %s1240_s26 = scalar_lea.hbm %s1473_s3, 128 }
 0x155   : > { %p1237_p8 = scmp.ne.s32.totalorder %s1428_s9, %s1236_s20  ;;  %p1241_p1 = scmp.lt.u32.totalorder %s1428_s9, %s1473_s3 }
 0x156   : > { %p1242_p0 = scmp.lt.u32.totalorder %s1240_s26, %s1236_s20  ;;  %p1244_p6 = scmp.lt.u32.totalorder %s1236_s20, %s1428_s9 }
 0x157   : > { %p1238_p11 = pnand %p1237_p8, %p1484_p9 }
 0x158   : > { %p1243_p5 = por %p1242_p0, %p1241_p1 }
 0x159   : > { %p1239_p13 = pneg %p1238_p11 }
 0x15a   : > { %p1245_p10 = por %p1244_p6, %p1243_p5 }
 0x15c   : > { %p1246_p12 = pnand %p1245_p10, %p1239_p13 }
 0x15e   : > { %1249 = shalt.err (!%p1246_p12)
}
 0x15f   : > { %1087 = dma.vmem_to_hbm [thread:$0]  (%p1484_p9), %s1430_s6, 64, %s1428_s9, %s832_s10  }
 0x160 PF: > { %p1099_p2 = scmp.ge.s32.totalorder %s1288_s15, 2  ;;  %s857_s29 = sand.u32 1, %s1276_s12  }
 0x161   : > { %p1485_p3 = scmp.ne.s32.totalorder %s1478_s23, 0  ;;  %s858_s30 = scalar_lea.sflag [#allocation4], %s857_s29 }
 0x163   : > { %p1094_p4 = pnand %p1099_p2, %p1485_p3 }
 0x165   : > { %1271 = dma.done.wait (!%p1094_p4), %s858_s30, 64  }
 0x166   : > { %1273 = vsyncadd (!%p1094_p4), %s858_s30, 4294967232  ;;  %p14_p7 = scmp.ge.s32.totalorder %s1341_s18, 4   ;;  %s1486_s12 = smov %s1280_s13 }
 0x167   : > { %s1487_s13 = smov %s1284_s14  ;;  %s1488_s14 = smov %s1352_s21 }
 0x168   : > { %s1489_s15 = smov %s1341_s18  ;;  %16 = sbr.rel (!%p14_p7) target bundleno = 4 (0x4), region = 72 }
 0x16f   :  { %863 = vsyncpa [#allocation3], 1 }
 0x170   :  { %865 = vsyncpa [#allocation3 + $0x1], 1 }
 0x171   :  { %866 = vsyncpa [#allocation4], 1 }
 0x172   :  { %868 = vsyncpa [#allocation4 + $0x1], 1 }

</bundles_post_ra>
